<compile_context>
chip_gen: v5e
topology: v5e:2x2
jax: 0.10.0
libtpu: 0.0.40
codegen_flags: <defaults>
</compile_context>

<pallas_src>
import functools

import jax
import jax.numpy as jnp
from jax.experimental import pallas as pl
from jax.experimental.pallas import tpu as pltpu


def _round_up(x, m):
    return (x + m - 1) // m * m


def _mlm_kernel(x_ref, wT_ref, b_ref, y_ref, logits_ref, lpart_ref, acc_ref,
                *, true_b, true_l, tb, tl):
    """Tiled logits = x @ wT + b plus BCE-with-logits partial sums.

    Grid = (j over L tiles, i over B tiles, k over K tiles).  j, i parallel;
    k is the reduction axis (last, "arbitrary").
    acc_ref:   VMEM f32 [tb, tl] matmul accumulator (resident over k).
    lpart_ref: f32 [8, tl] per-(i, j)-block loss partial sums (write-only,
               written once at the last k step -> no init / no RMW).
    """
    j = pl.program_id(0)          # L tile
    i = pl.program_id(1)          # B tile
    k = pl.program_id(2)          # K (hidden) tile
    nk = pl.num_programs(2)

    @pl.when(k == 0)
    def _init_acc():
        acc_ref[...] = jnp.zeros_like(acc_ref)

    # bf16 x bf16 -> f32 accumulate on the MXU.
    acc_ref[...] += jnp.dot(x_ref[...], wT_ref[...],
                            preferred_element_type=jnp.float32)

    @pl.when(k == nk - 1)
    def _finalize():
        z = acc_ref[...] + b_ref[...].astype(jnp.float32)          # [tb, tl]
        logits_ref[...] = z.astype(logits_ref.dtype)

        y = y_ref[...].astype(jnp.float32)
        # Numerically stable BCEWithLogits: max(z,0) - z*y + log1p(exp(-|z|))
        loss_elem = (jnp.maximum(z, 0.0) - z * y
                     + jnp.log1p(jnp.exp(-jnp.abs(z))))

        # Mask out zero-padded rows / label columns (only if padding exists).
        if (true_b % tb != 0) or (true_l % tl != 0):
            row = jax.lax.broadcasted_iota(jnp.int32, (tb, tl), 0) + i * tb
            col = jax.lax.broadcasted_iota(jnp.int32, (tb, tl), 1) + j * tl
            loss_elem = jnp.where((row < true_b) & (col < true_l),
                                  loss_elem, 0.0)

        # Fold tb rows down to 8 sublanes with static aligned slices.
        partial = loss_elem[0:8, :]
        for r in range(1, tb // 8):
            partial = partial + loss_elem[r * 8:(r + 1) * 8, :]
        lpart_ref[...] = partial


def prepare_head_params(weight, bias, *, tl=128, tk=128):
    """One-time preparation of the FROZEN linear head.

    weight: [L, H] (PyTorch Linear layout), bias: [L].
    Returns (wT_padded bf16 [H_pad, L_pad], bias_padded f32 [1, L_pad]).
    """
    L, H = weight.shape
    Hp = _round_up(H, tk)
    Lp = _round_up(L, tl)
    wT = jnp.pad(weight.T.astype(jnp.bfloat16), ((0, Hp - H), (0, Lp - L)))
    b = jnp.pad(bias.astype(jnp.float32), (0, Lp - L)).reshape(1, Lp)
    return wT, b


@functools.partial(jax.jit, static_argnames=("tb", "tl", "tk"))
def frozen_encoder_multilabel_forward(inputs, wT_p, b_p, labels,
                                      *, tb=32, tl=128, tk=128):
    """inputs: [B, H]; wT_p/b_p from prepare_head_params; labels: [B, L] 0/1.

    Returns (logits [B, L] f32, loss scalar f32).
    """
    assert tb % 32 == 0 and tl % 128 == 0 and tk % 128 == 0
    B, H = inputs.shape
    Lb = labels.shape[1]
    Hp, Lp = wT_p.shape
    assert Hp == _round_up(H, tk) and Lp == _round_up(Lb, tl)
    Bp = _round_up(B, tb)

    # Cast once (encoder activations -> bf16, labels -> int8); pad only when
    # shapes are not already tile-aligned.
    x_p = inputs.astype(jnp.bfloat16)
    if (Bp != B) or (Hp != H):
        x_p = jnp.pad(x_p, ((0, Bp - B), (0, Hp - H)))
    y_p = labels.astype(jnp.int8)
    if (Bp != B) or (Lp != Lb):
        y_p = jnp.pad(y_p, ((0, Bp - B), (0, Lp - Lb)))

    nj, ni, nk = Lp // tl, Bp // tb, Hp // tk

    kernel = functools.partial(_mlm_kernel, true_b=B, true_l=Lb, tb=tb, tl=tl)

    logits_p, lpart = pl.pallas_call(
        kernel,
        out_shape=(
            jax.ShapeDtypeStruct((Bp, Lp), jnp.float32),       # logits
            jax.ShapeDtypeStruct((8 * ni, Lp), jnp.float32),   # loss partials
        ),
        grid_spec=pltpu.PrefetchScalarGridSpec(
            num_scalar_prefetch=0,
            grid=(nj, ni, nk),
            in_specs=[
                pl.BlockSpec((tb, tk), lambda j, i, k: (i, k)),   # x  (bf16)
                pl.BlockSpec((tk, tl), lambda j, i, k: (k, j)),   # wT (bf16)
                pl.BlockSpec((1, tl), lambda j, i, k: (0, j)),    # bias (f32)
                pl.BlockSpec((tb, tl), lambda j, i, k: (i, j)),   # labels (i8)
            ],
            out_specs=[
                pl.BlockSpec((tb, tl), lambda j, i, k: (i, j)),   # logits
                pl.BlockSpec((8, tl), lambda j, i, k: (i, j)),    # loss part.
            ],
            scratch_shapes=[pltpu.VMEM((tb, tl), jnp.float32)],
        ),
        compiler_params=pltpu.CompilerParams(
            dimension_semantics=("parallel", "parallel", "arbitrary"),
            vmem_limit_bytes=32 * 1024 * 1024,
        ),
    )(x_p, wT_p, b_p, y_p)

    logits = logits_p[:B, :Lb]
    loss = jnp.sum(lpart) * (1.0 / (B * Lb))
    return logits, loss


def _reference_forward(inputs, weight, bias, labels):
    # Same bf16-operand / f32-accumulate matmul as the kernel.
    logits = jnp.dot(inputs.astype(jnp.bfloat16),
                     weight.T.astype(jnp.bfloat16),
                     preferred_element_type=jnp.float32) + bias.astype(jnp.float32)
    y = labels.astype(jnp.float32)
    loss_elem = (jnp.maximum(logits, 0.0) - logits * y
                 + jnp.log1p(jnp.exp(-jnp.abs(logits))))
    return logits, jnp.mean(loss_elem)


if __name__ == "__main__":
    key = jax.random.PRNGKey(0)
    k_x, k_w, k_b, k_y = jax.random.split(key, 4)

    # Small but tile-aligned shapes: batch=64, hidden=256, labels=256
    # -> grid (2 L-tiles, 2 B-tiles, 2 K-tiles) exercises the full pipeline.
    B, H, L = 64, 256, 256

    inputs = jax.random.normal(k_x, (B, H), dtype=jnp.float32)
    # "output_layer" parameters (PyTorch Linear layout [L, H]), frozen.
    weight = jax.random.normal(k_w, (L, H), dtype=jnp.float32) * 0.1
    bias = jax.random.normal(k_b, (L,), dtype=jnp.float32) * 0.01
    # Multi-hot 0/1 labels (torch assert requires exactly 0s and 1s).
    labels = jax.random.bernoulli(k_y, p=0.3, shape=(B, L)).astype(jnp.int8)
    assert int((labels == 0).sum() + (labels == 1).sum()) == B * L

    # Frozen head: prepare (transpose/pad/cast) ONCE, outside the hot path.
    wT_p, b_p = prepare_head_params(weight, bias, tl=128, tk=128)

    logits, loss = frozen_encoder_multilabel_forward(
        inputs, wT_p, b_p, labels, tb=32, tl=128, tk=128)
    jax.block_until_ready((logits, loss))

    ref_logits, ref_loss = _reference_forward(inputs, weight, bias, labels)
    assert logits.shape == (B, L)
    assert jnp.allclose(logits, ref_logits, atol=1e-3, rtol=1e-3)
    assert jnp.allclose(loss, ref_loss, atol=1e-4, rtol=1e-4)

    print("KERNEL_OK")
</pallas_src>

<mosaic_0001>
module attributes {stable_mosaic.version = 11 : i64} {
  func.func @_mlm_kernel(%arg0: i32, %arg1: i32, %arg2: i32, %arg3: memref<32x128xbf16, #tpu.memory_space<vmem>>, %arg4: memref<128x128xbf16, #tpu.memory_space<vmem>>, %arg5: memref<1x128xf32, #tpu.memory_space<vmem>>, %arg6: memref<32x128xi8, #tpu.memory_space<vmem>>, %arg7: memref<32x128xf32, #tpu.memory_space<vmem>>, %arg8: memref<8x128xf32, #tpu.memory_space<vmem>>, %arg9: memref<32x128xf32, #tpu.memory_space<vmem>>) attributes {dimension_semantics = [#tpu.dimension_semantics<parallel>, #tpu.dimension_semantics<parallel>, #tpu.dimension_semantics<arbitrary>], iteration_bounds = array<i64: 2, 2, 2>, scalar_prefetch = 0 : i64, scratch_operands = 1 : i64, tpu.core_type = #tpu.core_type<tc>, window_params = [{transform_indices = @transform_0, window_bounds = array<i64: 32, 128>}, {transform_indices = @transform_1, window_bounds = array<i64: 128, 128>}, {transform_indices = @transform_2, window_bounds = array<i64: 1, 128>}, {transform_indices = @transform_3, window_bounds = array<i64: 32, 128>}, {transform_indices = @transform_4, window_bounds = array<i64: 32, 128>}, {transform_indices = @transform_5, window_bounds = array<i64: 8, 128>}]} {
    %c0_i32 = arith.constant 0 : i32
    %0 = arith.cmpi eq, %arg2, %c0_i32 : i32
    %1 = arith.extui %0 : i1 to i32
    %c0_i32_0 = arith.constant 0 : i32
    %2 = arith.cmpi ne, %1, %c0_i32_0 : i32
    scf.if %2 {
      %cst_9 = arith.constant 0.000000e+00 : f32
      %12 = vector.broadcast %cst_9 : f32 to vector<32x128xf32>
      %c0_10 = arith.constant 0 : index
      %c0_11 = arith.constant 0 : index
      %13 = vector.load %arg9[%c0_10, %c0_11] : memref<32x128xf32, #tpu.memory_space<vmem>>, vector<32x128xf32>
      tpu.vector_store %arg9[%c0_10, %c0_11], %12 {strides = array<i32>} : memref<32x128xf32, #tpu.memory_space<vmem>>, vector<32x128xf32>,
    } else {
    }
    %c0 = arith.constant 0 : index
    %c0_1 = arith.constant 0 : index
    %3 = vector.load %arg9[%c0, %c0_1] : memref<32x128xf32, #tpu.memory_space<vmem>>, vector<32x128xf32>
    %c0_2 = arith.constant 0 : index
    %c0_3 = arith.constant 0 : index
    %4 = vector.load %arg3[%c0_2, %c0_3] : memref<32x128xbf16, #tpu.memory_space<vmem>>, vector<32x128xbf16>
    %c0_4 = arith.constant 0 : index
    %c0_5 = arith.constant 0 : index
    %5 = vector.load %arg4[%c0_4, %c0_5] : memref<128x128xbf16, #tpu.memory_space<vmem>>, vector<128x128xbf16>
    %cst = arith.constant dense<0.000000e+00> : vector<32x128xf32>
    %6 = tpu.matmul %4, %5, %cst {dimension_numbers = #tpu.dot_dimension_numbers<[1], [0], [0], [1], [0, 0, 1, 1], [], []>} : vector<32x128xbf16>, vector<128x128xbf16>, vector<32x128xf32> -> vector<32x128xf32>
    %7 = arith.addf %3, %6 : vector<32x128xf32>
    %c0_6 = arith.constant 0 : index
    %c0_7 = arith.constant 0 : index
    %8 = vector.load %arg9[%c0_6, %c0_7] : memref<32x128xf32, #tpu.memory_space<vmem>>, vector<32x128xf32>
    tpu.vector_store %arg9[%c0_6, %c0_7], %7 {strides = array<i32>} : memref<32x128xf32, #tpu.memory_space<vmem>>, vector<32x128xf32>,
    %c1_i32 = arith.constant 1 : i32
    %9 = arith.cmpi eq, %arg2, %c1_i32 : i32
    %10 = arith.extui %9 : i1 to i32
    %c0_i32_8 = arith.constant 0 : i32
    %11 = arith.cmpi ne, %10, %c0_i32_8 : i32
    scf.if %11 {
      %c0_9 = arith.constant 0 : index
      %c0_10 = arith.constant 0 : index
      %12 = vector.load %arg9[%c0_9, %c0_10] : memref<32x128xf32, #tpu.memory_space<vmem>>, vector<32x128xf32>
      %c0_11 = arith.constant 0 : index
      %c0_12 = arith.constant 0 : index
      %13 = vector.load %arg5[%c0_11, %c0_12] : memref<1x128xf32, #tpu.memory_space<vmem>>, vector<1x128xf32>
      %14 = vector.broadcast %13 : vector<1x128xf32> to vector<32x128xf32>
      %15 = arith.addf %12, %14 : vector<32x128xf32>
      %c0_13 = arith.constant 0 : index
      %c0_14 = arith.constant 0 : index
      %16 = vector.load %arg7[%c0_13, %c0_14] : memref<32x128xf32, #tpu.memory_space<vmem>>, vector<32x128xf32>
      tpu.vector_store %arg7[%c0_13, %c0_14], %15 {strides = array<i32>} : memref<32x128xf32, #tpu.memory_space<vmem>>, vector<32x128xf32>,
      %c0_15 = arith.constant 0 : index
      %c0_16 = arith.constant 0 : index
      %17 = vector.load %arg6[%c0_15, %c0_16] : memref<32x128xi8, #tpu.memory_space<vmem>>, vector<32x128xi8>
      %18 = arith.sitofp %17 : vector<32x128xi8> to vector<32x128xf32>
      %cst_17 = arith.constant 0.000000e+00 : f32
      %19 = vector.broadcast %cst_17 : f32 to vector<32x128xf32>
      %20 = arith.maximumf %15, %19 : vector<32x128xf32>
      %21 = arith.mulf %15, %18 : vector<32x128xf32>
      %22 = arith.subf %20, %21 : vector<32x128xf32>
      %23 = math.absf %15 : vector<32x128xf32>
      %cst_18 = arith.constant 0.000000e+00 : f32
      %24 = vector.broadcast %cst_18 : f32 to vector<32x128xf32>
      %25 = arith.subf %24, %23 : vector<32x128xf32>
      %26 = math.exp %25 : vector<32x128xf32>
      %27 = math.log1p %26 : vector<32x128xf32>
      %28 = arith.addf %22, %27 : vector<32x128xf32>
      %29 = vector.extract_strided_slice %28 {offsets = [0, 0], sizes = [8, 128], strides = [1, 1]} : vector<32x128xf32> to vector<8x128xf32>
      %30 = vector.extract_strided_slice %28 {offsets = [8, 0], sizes = [8, 128], strides = [1, 1]} : vector<32x128xf32> to vector<8x128xf32>
      %31 = arith.addf %29, %30 : vector<8x128xf32>
      %32 = vector.extract_strided_slice %28 {offsets = [16, 0], sizes = [8, 128], strides = [1, 1]} : vector<32x128xf32> to vector<8x128xf32>
      %33 = arith.addf %31, %32 : vector<8x128xf32>
      %34 = vector.extract_strided_slice %28 {offsets = [24, 0], sizes = [8, 128], strides = [1, 1]} : vector<32x128xf32> to vector<8x128xf32>
      %35 = arith.addf %33, %34 : vector<8x128xf32>
      %c0_19 = arith.constant 0 : index
      %c0_20 = arith.constant 0 : index
      %36 = vector.load %arg8[%c0_19, %c0_20] : memref<8x128xf32, #tpu.memory_space<vmem>>, vector<8x128xf32>
      tpu.vector_store %arg8[%c0_19, %c0_20], %35 {strides = array<i32>} : memref<8x128xf32, #tpu.memory_space<vmem>>, vector<8x128xf32>,
    } else {
    }
    return
  }
  func.func @transform_0(%arg0: i32, %arg1: i32, %arg2: i32) -> (i32, i32) {
    %c0_i32 = arith.constant 0 : i32
    return %arg1, %arg2 : i32, i32
  }
  func.func @transform_1(%arg0: i32, %arg1: i32, %arg2: i32) -> (i32, i32) {
    %c0_i32 = arith.constant 0 : i32
    return %arg2, %arg0 : i32, i32
  }
  func.func @transform_2(%arg0: i32, %arg1: i32, %arg2: i32) -> (i32, i32) {
    %c0_i32 = arith.constant 0 : i32
    %c0_i32_0 = arith.constant 0 : i32
    return %c0_i32, %arg0 : i32, i32
  }
  func.func @transform_3(%arg0: i32, %arg1: i32, %arg2: i32) -> (i32, i32) {
    %c0_i32 = arith.constant 0 : i32
    return %arg1, %arg0 : i32, i32
  }
  func.func @transform_4(%arg0: i32, %arg1: i32, %arg2: i32) -> (i32, i32) {
    %c0_i32 = arith.constant 0 : i32
    return %arg1, %arg0 : i32, i32
  }
  func.func @transform_5(%arg0: i32, %arg1: i32, %arg2: i32) -> (i32, i32) {
    %c0_i32 = arith.constant 0 : i32
    return %arg1, %arg0 : i32, i32
  }
}

</mosaic_0001>

<bundles_post_ra>
// kernel: frozen_encoder_multilabel_forward.1
= control target key start
LH: loop header
LB: loop body
LE: loop exit
PB: predicated region body
PF: predicated region fallthrough
CT: control target
= control target key end

     0   :  { %s1641_s0 = inlined_call_operand.vmem [shape: bf16[64,256], index: 0, kind: input, shape index: {}]   ;;  %s1642_s1 = inlined_call_operand.hbm [shape: bf16[256,256], index: 1, kind: input, shape index: {}]   ;;  %s1643_s2 = inlined_call_operand.vmem [shape: f32[1,256], index: 2, kind: input, shape index: {}]   ;;  %s1644_s3 = inlined_call_operand.vmem [shape: s8[64,256], index: 3, kind: input, shape index: {}]   ;;  %s1645_s4 = inlined_call_operand.hbm [shape: f32[64,256], index: 4, kind: output, shape index: {0}]   ;;  %s1646_s5 = inlined_call_operand.vmem [shape: f32[16,256], index: 5, kind: output, shape index: {1}]  }
   0x1   :  { %1658 = sst [smem:[#allocation22_spill]] %s1641_s0 }
   0x2   :  { %1659 = sst [smem:[#allocation23_spill]] %s1642_s1 }
   0x3   :  { %1660 = sst [smem:[#allocation24_spill]] %s1643_s2 }
   0x4   :  { %1661 = sst [smem:[#allocation25_spill]] %s1644_s3 }
   0x5   :  { %1662 = sst [smem:[#allocation26_spill]] %s1645_s4 }
   0x6   :  { %1663 = sst [smem:[#allocation27_spill]] %s1646_s5 }
   0x7   :  { %11 = vsyncpa [#allocation5], 0 }
   0x8   :  { %13 = vsyncpa [#allocation5 + $0x1], 0 }
   0x9   :  { %14 = vsyncpa [#allocation6], 0 }
   0xa   :  { %16 = vsyncpa [#allocation6 + $0x1], 0  ;;  %s1308_s18 = smov 0   ;;  %s1310_s19 = smov 0  }
   0xb   :  { %s1312_s20 = smov 0   ;;  %s1314_s21 = smov 0  }
   0xc   :  { %s1316_s22 = smov 0   ;;  %s1318_s23 = smov 0  }
   0xd   :  { %s1320_s24 = smov 0   ;;  %s1322_s25 = smov 0  }
   0xe   :  { %s1324_s26 = smov 0   ;;  %s1326_s27 = smov 0  }
   0xf   :  { %s1328_s28 = smov 0   ;;  %s1330_s29 = smov 0  }
  0x10   :  { %s1332_s30 = smov 0   ;;  %s1334_s6 = smov 0  }
  0x11   :  { %s1336_s7 = smov 0  }
  0x12 LB: > { %1664 = sst [smem:[#allocation10_spill]] %s1233_s23  ;;  %s34_s10 = sadd.s32 1, %s1257_s29  ;;  %s1269_s7 = sphi %s1336_s7, %s22_s7   ;;  %s1265_s6 = sphi %s1334_s6, %s1712_s6   ;;  %s1261_s30 = sphi %s1332_s30, %s1711_s30   ;;  %s1257_s29 = sphi %s1330_s29, %s1710_s29   ;;  %s1253_s28 = sphi %s1328_s28, %s1709_s28   ;;  %s1249_s27 = sphi %s1326_s27, %s1708_s27   ;;  %s1245_s26 = sphi %s1324_s26, %s1707_s26   ;;  %s1241_s25 = sphi %s1322_s25, %s1719_s25   ;;  %s1237_s24 = sphi %s1320_s24, %s1705_s24   ;;  %s1233_s23 = sphi %s1318_s23, %s1704_s23   ;;  %s1229_s22 = sphi %s1316_s22, %s1718_s22   ;;  %s1225_s21 = sphi %s1314_s21, %s1717_s21   ;;  %s1221_s20 = sphi %s1312_s20, %s1716_s20   ;;  %s1217_s19 = sphi %s1310_s19, %s1715_s19   ;;  %s1213_s18 = sphi %s1308_s18, %s1714_s18  }
  0x13   : > { %1665 = sst [smem:[#allocation11_spill]] %s1241_s25  ;;  %s37_s11 = sadd.s32 1, %s1261_s30 }
  0x14   : > { %1666 = sst [smem:[#allocation12_spill]] %s1245_s26  ;;  %p35_p0 = scmp.ge.s32.totalorder %s34_s10, 2 }
  0x15   : > { %1667 = sst [smem:[#allocation13_spill]] %s1249_s27  ;;  %s41_s12 = sadd.s32 1, %s1265_s6 }
  0x16   : > { %1668 = sst [smem:[#allocation14_spill]] %s1257_s29  ;;  %s50_s13 = sadd.s32 1, %s1241_s25 }
  0x17   : > { %1669 = sst [smem:[#allocation15_spill]] %s1261_s30  ;;  %p57_p1 = scmp.ne.s32.totalorder %s1241_s25, %s1237_s24 }
  0x18   : > { %1670 = sst [smem:[#allocation16_spill]] %s1265_s6  ;;  %s1721_s10 = smov (%p35_p0, %s34_s10), 0 }
  0x19   : > { %1671 = sst [smem:[#allocation17_spill]] %s1721_s10  ;;  %s1723_s11 = smov (!%p35_p0, %s37_s11), %s1261_s30 }
  0x1a   : > { %s46_s14 = ssub.s32 %s1257_s29, %s1721_s10  ;;  %p58_p2 = scmp.eq.s32.totalorder %s1269_s7, 0 }
  0x1b   : > { %p39_p3 = scmp.ge.s32.totalorder %s1723_s11, 2  ;;  %s78_s15 = sadd.s32 1, %s1233_s23 }
  0x1c   : > { %p1398_p4 = por %p58_p2, %p57_p1  ;;  %p85_p5 = scmp.ne.s32.totalorder %s1233_s23, %s1229_s22 }
  0x1d   : > { %s1725_s11 = smov (%p39_p3, %s1723_s11), 0  ;;  %s1727_s12 = smov (!%p39_p3, %s41_s12), %s1265_s6 }
  0x1e   : > { %1673 = sst [smem:[#allocation18_spill]] %s1725_s11  ;;  %s45_s17 = ssub.s32 %s1261_s30, %s1725_s11 }
  0x1f   : > { %p1409_p6 = por %p85_p5, %p58_p2  ;;  %p43_p7 = scmp.ge.s32.totalorder %s1727_s12, 2 }
  0x20   : > { %s47_s8 = sor.u32 %s46_s14, %s45_s17  ;;  %p91_p9 = scmp.ne.s32.totalorder %s1229_s22, %s1225_s21 }
  0x21   : > { %p48_p8 = scmp.eq.s32.totalorder %s47_s8, 0  ;;  %s1729_s12 = smov (%p43_p7, %s1727_s12), 0 }
  0x22   : > { %1675 = sst [smem:[#allocation19_spill]] %s1729_s12  ;;  %s74_s10 = ssub.s32 %s1265_s6, %s1729_s12 }
  0x23   : > { %s1418_s11 = scalar_select %p48_p8, %s1241_s25, %s50_s13  }
  0x24   : > { %s1677_s4 = sadd.s32 4294967295, %s1269_s7   ;;  %s75_s26 = sor.u32 %s74_s10, %s46_s14 }
  0x25   : > { %1676 = sst [smem:[#allocation20_spill]] %s1418_s11  ;;  %p92_p10 = scmp.eq.s32.totalorder %s1677_s4, 0 }
  0x26   : > { %s157_s5 = sor.u32 %s74_s10, %s45_s17  ;;  %p76_p11 = scmp.eq.s32.totalorder %s75_s26, 0 }
  0x27   : > { %p1424_p12 = por %p92_p10, %p91_p9  ;;  %p158_p13 = scmp.eq.s32.totalorder %s157_s5, 0 }
  0x28   : > { %s160_s8 = sadd.s32 1, %s1221_s20  ;;  %p170_p0 = scmp.ne.s32.totalorder %s1221_s20, %s1217_s19 }
  0x29   : > { %s1430_s2 = scalar_select %p76_p11, %s1233_s23, %s78_s15  }
  0x2a   : > { %s1433_s21 = scalar_select %p158_p13, %s1221_s20, %s160_s8  }
  0x2b   : > { %1679 = sst [smem:[#allocation21_spill]] %s1430_s2  ;;  %s1680_s27 = smov %s1677_s4 }
  0x2c   : > { %p171_p1 = scmp.eq.s32.totalorder %s1680_s27, 7  ;;  %p176_p2 = scmp.ne.s32.totalorder %s1217_s19, %s1213_s18 }
  0x2d   : > { %s1681_s13 = sadd.s32 4294967294, %s1269_s7   ;;  %p848_p8 = scmp.ge.s32.totalorder %s1269_s7, 8 }
  0x2e   : > { %p177_p3 = scmp.eq.s32.totalorder %s1681_s13, 7  ;;  %p1443_p5 = por %p171_p1, %p170_p0 }
  0x2f   : > { %221 = sbr.rel (%p848_p8) target bundleno = 78 (0x4e), region = 16 }
  0x30   : > { %p1447_p7 = por %p177_p3, %p176_p2 }
  0x34   : > { %224 = sbr.rel (!%p1398_p4) target bundleno = 66 (0x42), region = 20  ;;  %s226_s5 = sand.u32 (%p1398_p4), 1, %s1241_s25  }
  0x35   : > { %s913_s27 = sshll.u32 (%p1398_p4), %s1261_s30, 3  ;;  %s849_s10 = sshll.u32 (%p1398_p4), %s226_s5, 4 }
  0x36   : > { %s231_s14 = sadd.s32 (%p1398_p4), %s1257_s29, %s913_s27  ;;  %s1684_s0 = sld [smem:[#allocation22_spill]] (%p1398_p4) }
  0x37   : > { %s852_s15 = sshll.u32 (%p1398_p4), %s231_s14, 2  ;;  %s228_s12 = scalar_lea.vmem (%p1398_p4), [#allocation3], %s849_s10 }
  0x3c   : > { %s233_s13 = scalar_lea.vmem %s1684_s0, %s852_s15 }
  0x3d   : > { %v250_v0 = vld [vmem:[%s233_s13] sm:$0xf]  ;;  %v252_v1 = vld [vmem:[%s233_s13 + $0x8] sm:$0xf]  ;;  %v254_v2 = vld [vmem:[%s233_s13 + $0x10] sm:$0xf] }
  0x3e   : > { %251 = vst [vmem:[%s228_s12] sm:$0xf] %v250_v0  ;;  %v256_v3 = vld [vmem:[%s233_s13 + $0x18] sm:$0xf] }
  0x3f   : > { %253 = vst [vmem:[%s228_s12 + $0x4] sm:$0xf] %v252_v1 }
  0x40   : > { %255 = vst [vmem:[%s228_s12 + $0x8] sm:$0xf] %v254_v2 }
  0x41   : > { %257 = vst [vmem:[%s228_s12 + $0xc] sm:$0xf] %v256_v3 }
  0x42 PF: > { %s290_s16 = sand.u32 1, %s1233_s23   ;;  %s914_s5 = sshll.u32 %s1257_s29, 5 }
  0x43   : > { %s853_s27 = sshll.u32 %s290_s16, 6  ;;  %s299_s14 = sadd.s32 %s1265_s6, %s914_s5 }
  0x44   : > { %s856_s17 = sshll.u32 %s299_s14, 2  ;;  %s294_s15 = scalar_lea.vmem [#allocation4], %s853_s27 }
  0x45   : > { %s304_s8 = sshll.u32 %s294_s15, 4  ;;  %s1685_s1 = sld [smem:[#allocation23_spill]]  ;;  %s305_s8 = int_to_ptr.vmem [resolvable:$true] %s304_s8 }
  0x46   : > { %s291_s12 = scalar_lea.sflag [#allocation5], %s290_s16  ;;  %s1271_s11 = smov 128  }
  0x47   : > { %s1272_s25 = smov 64   ;;  %s1273_s2 = smov 4  }
  0x4b   : > { %s301_s10 = scalar_lea.hbm %s1685_s1, %s856_s17 }
  0x4c   : > { %s302_s13 = sshll.u32 %s301_s10, 4  ;;  %s303_s13 = int_to_ptr.hbm [resolvable:$true] %s302_s13 }
  0x4d   : > { %934 = dma.hbm_to_vmem [thread:$0]  (%p1409_p6), %s303_s13, 1024, %s305_s8, %s291_s12, %s1271_s11, %s1272_s25, %s1273_s2  }
  0x4e PF: > { %p857_p4 = scmp.ge.s32.totalorder %s1269_s7, 1  ;;  %p329_p9 = scmp.lt.s32.totalorder %s1269_s7, 9 }
  0x50   : > { %p330_p10 = pnand %p857_p4, %p329_p9 }
  0x51   : > { %s336_s0 = sand.u32 (!%p330_p10), 1, %s1237_s24   ;;  %s342_s30 = sand.u32 (!%p330_p10), 1, %s1229_s22  }
  0x52   : > { %333 = sbr.rel (%p330_p10) target bundleno = 350 (0x15e), region = 73  ;;  %s1472_s5 = sshll.u32 (!%p330_p10), %s336_s0, 4 }
  0x53   : > { %s859_s16 = sshll.u32 (!%p330_p10), %s342_s30, 6  ;;  %s343_s14 = scalar_lea.sflag (!%p330_p10), [#allocation5], %s342_s30 }
  0x54   : > { %s1475_s9 = scalar_lea.vmem (!%p330_p10), [#allocation4], %s859_s16 }
  0x57   : > { %1204 = dma.done.wait (%p1424_p12), %s343_s14, 1024  }
  0x58   : > { %1206 = vsyncadd (%p1424_p12), %s343_s14, 4294966272  ;;  %s1686_s2 = sld [smem:[#allocation13_spill]]  ;;  %s1654_s24 = sand.u32 1, %s1217_s19  }
  0x59   : > { %p399_p6 = scmp.lt.s32.totalorder %s1253_s28, 1  ;;  %s860_s25 = sshll.u32 %s1654_s24, 5 }
  0x5a   : > { %s1687_s3 = sld [smem:[#allocation24_spill]]  ;;  %s1505_s29 = scalar_lea.vmem [#allocation7], %s860_s25 }
  0x5b   : > { %s1487_s11 = scalar_select %p399_p6, %s1253_s28, 1 }
  0x5c   : > { %s1688_s16 = sld [smem:[#allocation25_spill]] }
  0x5d   : > { %s1689_s1 = sld [smem:[#allocation27_spill]] }
  0x5e   : > { %p402_p11 = scmp.lt.s32.totalorder %s1686_s2, 1  ;;  %s1690_s23 = sld [smem:[#allocation12_spill]] }
  0x60   : > { %s1731_s2 = smov (!%p402_p11, %s1686_s2), 1  ;;  %s401_s8 = scalar_lea.vmem %s1687_s3, %s1487_s11 }
  0x61   : > { %s861_s10 = sshll.u32 %s1731_s2, 1 }
  0x62   : > { %s407_s13 = sadd.s32 %s861_s10, %s1487_s11 }
  0x63   : > { %s862_s12 = sshll.u32 %s407_s13, 3 }
  0x64   : > { %s1498_s14 = scalar_lea.vmem %s1688_s16, %s862_s12  ;;  %s1503_s6 = scalar_lea.vmem %s1689_s1, %s862_s12 }
  0x65   : > { %p865_p12 = scmp.ne.s32.totalorder %s1690_s23, 0 }
  0x67   : > { %422 = sbr.rel (%p865_p12) target bundleno = 113 (0x71), region = 85 }
  0x6c   : > { %v1274_v4 = vmov 0.0  }
  0x6d   : > { %423 = vst [vmem:[#allocation2 + $0x10] sm:$0xff] %v1274_v4 }
  0x6e   : > { %424 = vst [vmem:[#allocation2] sm:$0xff] %v1274_v4 }
  0x6f   : > { %425 = vst [vmem:[#allocation2 + $0x18] sm:$0xff] %v1274_v4 }
  0x70   : > { %426 = vst [vmem:[#allocation2 + $0x8] sm:$0xff] %v1274_v4 }
  0x71 PF: > { %v924_v5 = vld [vmem:[%s1475_s9 + $0x38] sm:$0xff]  ;;  %v923_v6 = vld [vmem:[%s1475_s9 + $0x30] sm:$0xff]  ;;  %v922_v7 = vld [vmem:[%s1475_s9 + $0x28] sm:$0xff]  ;;  %s1691_s1 = scalar_lea.vmem [#allocation3], %s1472_s5  ;;  %s1693_s5 = sld [smem:[#allocation12_spill]] }
  0x72   : > { %511 = vmatpush.bf16.msra.mxu0 %v924_v5  ;;  %926 = vmatpush.bf16.msra.mxu1 %v924_v5  ;;  %v921_v8 = vld [vmem:[%s1475_s9 + $0x20] sm:$0xff]  ;;  %v920_v9 = vld [vmem:[%s1475_s9 + $0x18] sm:$0xff]  ;;  %v919_v10 = vld [vmem:[%s1475_s9 + $0x10] sm:$0xff]  ;;  %s1692_s23 = smov %s1691_s1 }
  0x73   : > { %v918_v11 = vld [vmem:[%s1475_s9 + $0x8] sm:$0xff]  ;;  %v917_v12 = vld [vmem:[%s1475_s9] sm:$0xff] }
  0x74   : > { %v915_v13 = vld [vmem:[%s1691_s1] sm:$0xff]  ;;  %v916_v14 = vld [vmem:[%s1692_s23 + $0x8] sm:$0xff] }
  0x75   : > { %v427_v15 = vld [vmem:[#allocation2 + $0x10] sm:$0xff]  ;;  %v428_v21 = vld [vmem:[#allocation2] sm:$0xff] }
  0x76   : > { %512 = vmatpush.bf16.msra.mxu0 %v923_v6  ;;  %927 = vmatpush.bf16.msra.mxu1 %v923_v6  ;;  %v429_v16 = vld [vmem:[#allocation2 + $0x18] sm:$0xff] }
  0x77   : > { %v430_v22 = vld [vmem:[#allocation2 + $0x8] sm:$0xff]  ;;  %p906_p13 = scmp.ne.s32.totalorder %s1693_s5, 1 }
  0x7a   : > { %513 = vmatpush.bf16.msra.mxu0 %v922_v7  ;;  %928 = vmatpush.bf16.msra.mxu1 %v922_v7 }
  0x7e   : > { %514 = vmatpush.bf16.msra.mxu0 %v921_v8  ;;  %929 = vmatpush.bf16.msra.mxu1 %v921_v8 }
  0x82   : > { %515 = vmatpush.bf16.msra.mxu0 %v920_v9  ;;  %930 = vmatpush.bf16.msra.mxu1 %v920_v9 }
  0x86   : > { %516 = vmatpush.bf16.msra.mxu0 %v919_v10  ;;  %931 = vmatpush.bf16.msra.mxu1 %v919_v10 }
  0x8a   : > { %517 = vmatpush.bf16.msra.mxu0 %v918_v11  ;;  %932 = vmatpush.bf16.msra.mxu1 %v918_v11 }
  0x8e   : > { %518 = vmatpush.bf16.msra.mxu0 %v917_v12  ;;  %933 = vmatpush.bf16.msra.mxu1 %v917_v12 }
  0x91   : > { %519 = vmatmul.bf16.vlgmr.msra.gmra.mxu0 %v915_v13  ;;  %524 = vmatmul.bf16.vlgmr.msra.gmra.mxu1 %v916_v14 }
 0x10e   : > { %v520_v17 = vpop.f32.mrf.mxu0  ;;  %v525_v18 = vpop.f32.mrf.mxu1 }
 0x10f   : > { %v530_v19 = vadd.f32 %v520_v17, %v427_v15  ;;  %v532_v20 = vadd.f32 %v525_v18, %v429_v16 }
 0x111   : > { %534 = vst [vmem:[#allocation2 + $0x10] sm:$0xff] %v530_v19 }
 0x112   : > { %536 = vst [vmem:[#allocation2 + $0x18] sm:$0xff] %v532_v20 }
 0x116   : > { %v522_v23 = vpop.f32.mrf.mxu0  ;;  %v527_v24 = vpop.f32.mrf.mxu1  ;;  %541 = sbr.rel (%p906_p13) target bundleno = 325 (0x145), region = 89 }
 0x117   : > { %v531_v25 = vadd.f32 %v522_v23, %v428_v21  ;;  %v533_v26 = vadd.f32 %v527_v24, %v430_v22 }
 0x119   : > { %535 = vst [vmem:[#allocation2] sm:$0xff] %v531_v25 }
 0x11a   : > { %537 = vst [vmem:[#allocation2 + $0x8] sm:$0xff] %v533_v26 }
 0x11b   : > { %v542_v27 = vld [vmem:[#allocation2 + $0x10] sm:$0xff]  ;;  %v1070_v28 = vld [vmem:[%s401_s8] ss:$0 sm:$0xff]  ;;  %v544_v30 = vld [vmem:[#allocation2 + $0x18] sm:$0xff] }
 0x11c   : > { %v1526_v32 = vadd.f32 %v1070_v28, %v542_v27  ;;  %v1530_v34 = vadd.f32 %v1070_v28, %v544_v30  ;;  %v558_v48 = vld [vmem:[%s1498_s14] sm:$0xff] }
 0x11d   : > { %v559_v49 = vunpack.c.0.s8 %v558_v48  ;;  %v560_v50 = vunpack.c.1.s8 %v558_v48  ;;  %v561_v51 = vunpack.c.2.s8 %v558_v48  ;;  %v562_v52 = vunpack.c.3.s8 %v558_v48 }
 0x11e   : > { %554 = vst [vmem:[%s1505_s29] sm:$0xff] %v1526_v32  ;;  %v579_v36 = vand.u32 2147483647, %v1526_v32  ;;  %v581_v38 = vand.u32 2147483647, %v1530_v34  ;;  %v567_v1 = vmax.f32 %v1526_v32, 0.0  ;;  %v569_v14 = vmax.f32 %v1530_v34, 0.0 }
 0x11f   : > { %556 = vst [vmem:[%s1505_s29 + $0x10] sm:$0xff] %v1530_v34  ;;  %v563_v54 = vcvt.s32.f32 %v559_v49  ;;  %v564_v56 = vcvt.s32.f32 %v560_v50  ;;  %v565_v60 = vcvt.s32.f32 %v561_v51  ;;  %v566_v61 = vcvt.s32.f32 %v562_v52 }
 0x120   : > { %v543_v29 = vld [vmem:[#allocation2] sm:$0xff]  ;;  %v583_v40 = vsub.f32 0.0, %v579_v36  ;;  %v585_v42 = vsub.f32 0.0, %v581_v38 }
 0x121   : > { %v545_v31 = vld [vmem:[#allocation2 + $0x8] sm:$0xff]  ;;  %v1528_v33 = vadd.f32 %v1070_v28, %v543_v29  ;;  %v571_v4 = vmul.f32 %v563_v54, %v1526_v32  ;;  %v573_v15 = vmul.f32 %v565_v60, %v1530_v34 }
 0x122   : > { %v1532_v35 = vadd.f32 %v1070_v28, %v545_v31  ;;  %v587_v44 = vmul.f32 1.442695, %v583_v40  ;;  %v591_v46 = vmul.f32 1.442695, %v585_v42 }
 0x123   : > { %v580_v37 = vand.u32 2147483647, %v1528_v33  ;;  %555 = vst [vmem:[%s1505_s29 + $0x8] sm:$0xff] %v1528_v33  ;;  %v568_v2 = vmax.f32 %v1528_v33, 0.0  ;;  %v572_v10 = vmul.f32 %v564_v56, %v1528_v33  ;;  %v575_v22 = vsub.f32 %v567_v1, %v571_v4 }
 0x124   : > { %v582_v39 = vand.u32 2147483647, %v1532_v35  ;;  %557 = vst [vmem:[%s1505_s29 + $0x18] sm:$0xff] %v1532_v35  ;;  %1071 = vpow2.f32 %v587_v44  ;;  %v570_v17 = vmax.f32 %v1532_v35, 0.0  ;;  %v574_v18 = vmul.f32 %v566_v61, %v1532_v35 }
 0x125   : > { %v584_v41 = vsub.f32 0.0, %v580_v37  ;;  %v576_v27 = vsub.f32 %v568_v2, %v572_v10  ;;  %v577_v32 = vsub.f32 %v569_v14, %v573_v15 }
 0x126   : > { %v586_v43 = vsub.f32 0.0, %v582_v39  ;;  %v578_v38 = vsub.f32 %v570_v17, %v574_v18 }
 0x127   : > { %v589_v45 = vmul.f32 1.442695, %v584_v41 }
 0x128   : > { %v593_v47 = vmul.f32 1.442695, %v586_v43 }
 0x129   : > { %1073 = vpow2.f32 %v589_v45 }
 0x12a   : > { %1075 = vpow2.f32 %v591_v46  ;;  %v1072_v53 = vpop.eup %1071 }
 0x12b   : > { %1077 = vpow2.f32 %v593_v47  ;;  %v595_v57 = vadd.f32 1.0, %v1072_v53  ;;  %v598_v58 = vmul.f32 -0.5, %v1072_v53  ;;  %v601_v7 = vand.u32 2147483647, %v1072_v53 }
 0x12d   : > { %1079 = vlog2.f32 %v595_v57  ;;  %v599_v5 = vadd.f32 1.0, %v598_v58  ;;  %vm1555_vm0 = vcmp.lt.f32.partialorder %v601_v7, 0.0004427343 }
 0x12f   : > { %v1074_v55 = vpop.eup %1073  ;;  %v600_v19 = vmul.f32 %v1072_v53, %v599_v5 }
 0x130   : > { %v1076_v59 = vpop.eup %1075  ;;  %v604_v62 = vadd.f32 1.0, %v1074_v55  ;;  %v607_v63 = vmul.f32 -0.5, %v1074_v55  ;;  %v610_v11 = vand.u32 2147483647, %v1074_v55 }
 0x131   : > { %v1078_v0 = vpop.eup %1077  ;;  %v613_v3 = vadd.f32 1.0, %v1076_v59  ;;  %v616_v6 = vmul.f32 -0.5, %v1076_v59  ;;  %v619_v16 = vand.u32 2147483647, %v1076_v59 }
 0x132   : > { %1081 = vlog2.f32 %v604_v62  ;;  %v608_v8 = vadd.f32 1.0, %v607_v63  ;;  %v622_v9 = vadd.f32 1.0, %v1078_v0  ;;  %v625_v13 = vmul.f32 -0.5, %v1078_v0 }
 0x133   : > { %1083 = vlog2.f32 %v613_v3  ;;  %v617_v12 = vadd.f32 1.0, %v616_v6  ;;  %v1080_v21 = vpop.eup %1079  ;;  %v628_v25 = vand.u32 2147483647, %v1078_v0  ;;  %vm1559_vm1 = vcmp.lt.f32.partialorder %v610_v11, 0.0004427343 }
 0x134   : > { %1085 = vlog2.f32 %v622_v9  ;;  %v626_v20 = vadd.f32 1.0, %v625_v13  ;;  %v609_v24 = vmul.f32 %v1074_v55, %v608_v8  ;;  %v597_v28 = vmul.f32 0.6931472, %v1080_v21 }
 0x135   : > { %v618_v30 = vmul.f32 %v1076_v59, %v617_v12  ;;  %vm620_vm2 = vcmp.lt.f32.partialorder %v619_v16, 0.0004427343  ;;  %vm629_vm3 = vcmp.lt.f32.partialorder %v628_v25, 0.0004427343 }
 0x136   : > { %v603_v34 = vsel %vm1555_vm0, %v600_v19, %v597_v28  ;;  %v627_v36 = vmul.f32 %v1078_v0, %v626_v20 }
 0x137   : > { %v631_v40 = vadd.f32 %v603_v34, %v575_v22 }
 0x138   : > { %v1082_v26 = vpop.eup %1081 }
 0x139   : > { %v1084_v31 = vpop.eup %1083  ;;  %v606_v33 = vmul.f32 0.6931472, %v1082_v26 }
 0x13a   : > { %v615_v35 = vmul.f32 0.6931472, %v1084_v31  ;;  %v1086_v37 = vpop.eup %1085 }
 0x13b   : > { %v612_v39 = vsel %vm1559_vm1, %v609_v24, %v606_v33  ;;  %v624_v42 = vmul.f32 0.6931472, %v1086_v37 }
 0x13c   : > { %v621_v41 = vsel %vm620_vm2, %v618_v30, %v615_v35  ;;  %v632_v43 = vadd.f32 %v612_v39, %v576_v27 }
 0x13d   : > { %v633_v44 = vadd.f32 %v621_v41, %v577_v32  ;;  %v630_v45 = vsel %vm629_vm3, %v627_v36, %v624_v42 }
 0x13e   : > { %v635_v46 = vadd.f32 %v632_v43, %v631_v40  ;;  %v634_v47 = vadd.f32 %v630_v45, %v578_v38 }
 0x140   : > { %v636_v48 = vadd.f32 %v635_v46, %v633_v44 }
 0x142   : > { %v637_v49 = vadd.f32 %v636_v48, %v634_v47 }
 0x144   : > { %638 = vst [vmem:[%s1503_s6] sm:$0xff] %v637_v49 }
 0x145 PF: > { %s1699_s24 = sld [smem:[#allocation13_spill]]  ;;  %s662_s17 = sshll.u32 %s1505_s29, 4  ;;  %s663_s17 = int_to_ptr.vmem [resolvable:$true] %s662_s17 }
 0x146   : > { %s1700_s10 = sld [smem:[#allocation26_spill]]  ;;  %s1701_s0 = sand.u32 1, %s1217_s19  }
 0x147   : > { %s640_s30 = scalar_lea.sflag [#allocation6], %s1701_s0 }
 0x14b   : > { %s925_s25 = sshll.u32 %s1699_s24, 3 }
 0x14c   : > { %s659_s11 = sadd.s32 %s1253_s28, %s925_s25  ;;  %s1135_s29 = scalar_lea.hbm %s1700_s10, 128 }
 0x14d   : > { %s910_s15 = sshll.u32 %s659_s11, 3 }
 0x14e   : > { %s661_s13 = scalar_lea.hbm %s1700_s10, %s910_s15 }
 0x14f   : > { %s664_s12 = sshll.u32 %s661_s13, 4  ;;  %s665_s12 = int_to_ptr.hbm [resolvable:$true] %s664_s12 }
 0x150   : > { %s1129_s6 = sshra.s32 %s665_s12, 4  ;;  %s1130_s6 = int_to_ptr.hbm [resolvable:$true] %s1129_s6 }
 0x151   : > { %s1131_s16 = scalar_lea.hbm %s1130_s6, 32  ;;  %p1136_p3 = scmp.lt.s32.totalorder %s1130_s6, %s1700_s10 }
 0x152   : > { %p1132_p0 = scmp.ne.s32.totalorder %s1130_s6, %s1131_s16  ;;  %p1137_p8 = scmp.lt.s32.totalorder %s1135_s29, %s1131_s16 }
 0x154   : > { %p1133_p1 = pnand %p1132_p0, %p1443_p5  ;;  %p1138_p4 = por %p1137_p8, %p1136_p3 }
 0x156   : > { %p1134_p2 = pneg %p1133_p1 }
 0x158   : > { %p1139_p9 = pnand %p1138_p4, %p1134_p2 }
 0x15a   : > { %1142 = shalt.err (!%p1139_p9)
}
 0x15b   : > { %s1275_s5 = smov 128   ;;  %s1276_s27 = smov 256  }
 0x15c   : > { %s1277_s9 = smov 8  }
 0x15d   : > { %936 = dma.vmem_to_hbm [thread:$0]  (%p1443_p5), %s663_s17, 512, %s665_s12, %s640_s30, %s1275_s5, %s1276_s27, %s1277_s9  }
 0x15e PF: > { %p942_p10 = scmp.ge.s32.totalorder %s1269_s7, 2  ;;  %s682_s2 = sand.u32 1, %s1213_s18  }
 0x15f   : > { %s683_s24 = scalar_lea.sflag [#allocation6], %s682_s2 }
 0x160   : > { %p939_p6 = pnand %p942_p10, %p1447_p7 }
 0x162   : > { %p940_p11 = pneg %p939_p6 }
 0x164   : > { %1208 = dma.done.wait (%p940_p11), %s683_s24, 512  }
 0x165   : > { %1210 = vsyncadd (%p940_p11), %s683_s24, 4294966784  ;;  %s22_s7 = sadd.s32 1, %s1269_s7   ;;  %s1703_s4 = sld [smem:[#allocation10_spill]] }
 0x166   : > { %p1591_p12 = scmp.ge.s32.totalorder %s22_s7, 10   ;;  %s1704_s23 = sld [smem:[#allocation21_spill]] }
 0x167   : > { %s1705_s24 = sld [smem:[#allocation11_spill]]  ;;  %s1714_s18 = smov %s1217_s19 }
 0x168   : > { %s1706_s11 = sld [smem:[#allocation20_spill]]  ;;  %s1715_s19 = smov %s1221_s20 }
 0x169   : > { %s1707_s26 = sld [smem:[#allocation14_spill]]  ;;  %s1716_s20 = smov %s1433_s21 }
 0x16a   : > { %s1708_s27 = sld [smem:[#allocation15_spill]]  ;;  %s1717_s21 = smov %s1229_s22 }
 0x16b   : > { %s1709_s28 = sld [smem:[#allocation16_spill]]  ;;  %s1718_s22 = smov %s1703_s4 }
 0x16c   : > { %s1710_s29 = sld [smem:[#allocation17_spill]]  ;;  %21 = sbr.rel (!%p1591_p12) target bundleno = 18 (0x12), region = 156 }
 0x16d   : > { %s1711_s30 = sld [smem:[#allocation18_spill]] }
 0x16e   : > { %s1712_s6 = sld [smem:[#allocation19_spill]]  ;;  %s1719_s25 = smov %s1706_s11 }
 0x171   :  { %700 = vsyncpa [#allocation5], 1 }
 0x172   :  { %702 = vsyncpa [#allocation5 + $0x1], 1 }
 0x173   :  { %703 = vsyncpa [#allocation6], 1 }
 0x174   :  { %705 = vsyncpa [#allocation6 + $0x1], 1 }

</bundles_post_ra>
